<compile_context>
chip_gen: v7x
topology: tpu7x:2x2x1
jax: 0.10.0
libtpu: 0.0.40
codegen_flags: <defaults>
</compile_context>

<pallas_src>
import functools

import jax
import jax.numpy as jnp
from jax import lax
from jax.experimental import pallas as pl
from jax.experimental.pallas import tpu as pltpu


def _conv_lrelu_kernel(x_ref, w_ref, b_ref, o_ref, *, KH, KW, H_tile, neg_slope):
    """Grid = (batch, H-tile).

    x_ref : (1, Hp, Wp, Cin)        padded image, resident across the t axis
    w_ref : (KH*KW*Cin, Cout)       im2col-flattened weight (VMEM)
    b_ref : (1, Cout)               bias (f32, VMEM)
    o_ref : (1, H_tile, W, Cout)    output tile (un-padded Cout)
    """
    t = pl.program_id(1)
    _, _, W, Cout = o_ref.shape
    Cin = x_ref.shape[-1]
    H_halo = H_tile + KH - 1

    # Halo'd row band for this output tile, sliced out of the resident image.
    row0 = pl.multiple_of(t * H_tile, H_tile)
    band = x_ref[0, pl.ds(row0, H_halo)]            # (H_halo, Wp, Cin)

    # im2col as a value: 9 shifted views concatenated along the channel axis,
    # fed straight into a single MXU contraction (no VMEM scratch round-trip).
    views = []
    for kh in range(KH):
        for kw in range(KW):
            views.append(band[kh:kh + H_tile, kw:kw + W, :])   # (H_tile, W, Cin)
    patch = jnp.concatenate(views, axis=-1)          # (H_tile, W, KH*KW*Cin)
    patch = patch.reshape(H_tile * W, KH * KW * Cin)

    acc = jnp.dot(patch, w_ref[...], preferred_element_type=jnp.float32)
    acc = acc + b_ref[...].astype(jnp.float32)                   # bias
    acc = jnp.where(acc > 0, acc, neg_slope * acc)               # leaky_relu(0.2)
    o_ref[...] = acc.reshape(1, H_tile, W, Cout).astype(o_ref.dtype)


def _phys_bytes(shape, itemsize):
    """Rough physical VMEM footprint with (8, 128) padding on the minor dims."""
    s = list(shape)
    if len(s) >= 1:
        s[-1] = -(-s[-1] // 128) * 128
    if len(s) >= 2:
        s[-2] = -(-s[-2] // 8) * 8
    n = 1
    for d in s:
        n *= d
    return n * itemsize


def _pick_h_tile(H, W, target_m=2048):
    """Smallest divisor of H with h_tile*W >= target_m (falls back to full H)."""
    for d in range(1, H + 1):
        if H % d == 0 and d * W >= target_m:
            return d
    return H


def conv_leaky_relu_nhwc(x_nhwc, w_hwio, bias, *, padding=1, neg_slope=0.2,
                         compute_dtype=jnp.bfloat16, h_tile=None,
                         out_dtype=None):
    """conv2d('same', stride=1) + bias + leaky_relu, NHWC in / NHWC out."""
    B, H, W, Cin = x_nhwc.shape
    KH, KW, Cin_w, Cout = w_hwio.shape
    assert Cin == Cin_w
    assert 2 * padding == KH - 1 and 2 * padding == KW - 1, \
        "kernel assumes 'same' convolution (padding = (K-1)/2)"
    Hp, Wp = H + 2 * padding, W + 2 * padding

    if out_dtype is None:
        out_dtype = x_nhwc.dtype
    cds = jnp.dtype(compute_dtype).itemsize
    ods = jnp.dtype(out_dtype).itemsize
    K_dim = KH * KW * Cin

    if h_tile is None:
        h_tile = _pick_h_tile(H, W)
    assert H % h_tile == 0, "H must be divisible by h_tile (ragged tile: TODO)"
    T = H // h_tile

    # Pad + cast; XLA fuses this with the wrapper's NCHW->NHWC transpose into a
    # single pass over the activation.
    x_pad = jnp.pad(x_nhwc.astype(compute_dtype),
                    ((0, 0), (padding, padding), (padding, padding), (0, 0)))
    # HWIO -> (KH*KW*Cin, Cout); no lane padding of Cout (stores stay un-padded).
    w_flat = w_hwio.reshape(K_dim, Cout).astype(compute_dtype)
    b2 = bias.astype(jnp.float32).reshape(1, Cout)

    kernel = functools.partial(_conv_lrelu_kernel, KH=KH, KW=KW,
                               H_tile=h_tile, neg_slope=neg_slope)

    # Working-set estimate (inputs/outputs double-buffered by the pipeline).
    est = (2 * _phys_bytes((1, Hp, Wp, Cin), cds)          # resident image blk
           + 2 * _phys_bytes((K_dim, Cout), cds)           # weight
           + 2 * _phys_bytes((1, Cout), 4)                 # bias
           + 2 * _phys_bytes((1, h_tile, W, Cout), ods)    # output tile
           + _phys_bytes((h_tile * W, K_dim), cds)         # im2col value
           + 2 * _phys_bytes((h_tile * W, Cout), 4))       # f32 accumulator
    # Cap at 48 MiB so the request also fits v7x's 64 MiB/TC VMEM.
    vmem_limit = int(max(16 * 2**20, min(48 * 2**20, est + 8 * 2**20)))

    cost = pl.CostEstimate(
        flops=2 * B * H * W * K_dim * Cout,
        transcendentals=0,
        bytes_accessed=int(x_pad.size * cds + w_flat.size * cds
                           + B * H * W * Cout * ods))

    out = pl.pallas_call(
        kernel,
        out_shape=jax.ShapeDtypeStruct((B, H, W, Cout), out_dtype),
        grid=(B, T),
        in_specs=[
            # Full padded image per batch element; block index constant in t,
            # so it stays resident across the whole t sweep.
            pl.BlockSpec((1, Hp, Wp, Cin), lambda b, t: (b, 0, 0, 0)),
            pl.BlockSpec((K_dim, Cout), lambda b, t: (0, 0)),
            pl.BlockSpec((1, Cout), lambda b, t: (0, 0)),
        ],
        out_specs=pl.BlockSpec((1, h_tile, W, Cout), lambda b, t: (b, t, 0, 0)),
        compiler_params=pltpu.CompilerParams(
            dimension_semantics=("parallel", "parallel"),
            vmem_limit_bytes=vmem_limit),
        cost_estimate=cost,
    )(x_pad, w_flat, b2)
    return out


def conv_bn_leaky_relu_2d(x_nchw, weight_oihw, bias, *, padding=1,
                          neg_slope=0.2, compute_dtype=jnp.bfloat16,
                          h_tile=None):
    """Matches ConvBnLeakyRelu2d.forward (NCHW API like the PyTorch module)."""
    x_nhwc = jnp.transpose(x_nchw, (0, 2, 3, 1))
    w_hwio = jnp.transpose(weight_oihw, (2, 3, 1, 0))
    out_nhwc = conv_leaky_relu_nhwc(
        x_nhwc, w_hwio, bias, padding=padding, neg_slope=neg_slope,
        compute_dtype=compute_dtype, h_tile=h_tile, out_dtype=x_nchw.dtype)
    # TODO(synk): keep the whole network NHWC end-to-end to avoid the
    # per-layer NCHW<->NHWC transposes (pure HBM traffic).
    return jnp.transpose(out_nhwc, (0, 3, 1, 2))


if __name__ == "__main__":
    key = jax.random.PRNGKey(0)
    k_x, k_w, k_b = jax.random.split(key, 3)

    B, Cin, H, W = 2, 4, 16, 16
    Cout, KH, KW = 8, 3, 3

    x = jax.random.normal(k_x, (B, Cin, H, W), dtype=jnp.float32)
    fan_in = Cin * KH * KW
    bound = 1.0 / (fan_in ** 0.5)
    weight = jax.random.uniform(k_w, (Cout, Cin, KH, KW), dtype=jnp.float32,
                                minval=-bound, maxval=bound)
    bias = jax.random.uniform(k_b, (Cout,), dtype=jnp.float32,
                              minval=-bound, maxval=bound)

    # Pure-JAX f32 reference of the same forward pass.
    x_nhwc = jnp.transpose(x, (0, 2, 3, 1))
    w_hwio = jnp.transpose(weight, (2, 3, 1, 0))
    ref = lax.conv_general_dilated(
        x_nhwc, w_hwio, window_strides=(1, 1), padding="SAME",
        dimension_numbers=("NHWC", "HWIO", "NHWC")) + bias
    ref = jnp.where(ref > 0, ref, 0.2 * ref)
    ref = jnp.transpose(ref, (0, 3, 1, 2))

    # Exercise the single-tile path (whole image, T=1) and the multi-tile
    # path (T=2, dynamic row-band slicing).  bf16 operands / f32 accumulation,
    # hence the 3e-2 tolerance.
    for ht in (None, 8):
        out = jax.block_until_ready(conv_bn_leaky_relu_2d(x, weight, bias,
                                                          h_tile=ht))
        assert out.shape == ref.shape
        max_err = float(jnp.max(jnp.abs(out - ref)))
        assert jnp.allclose(out, ref, atol=3e-2, rtol=3e-2), (
            f"mismatch vs reference (h_tile={ht}, max_err={max_err})")

    print("KERNEL_OK")
</pallas_src>

<mosaic_0001>
module attributes {stable_mosaic.version = 11 : i64} {
  func.func @_conv_lrelu_kernel(%arg0: i32, %arg1: i32, %arg2: memref<1x18x18x4xbf16, #tpu.memory_space<vmem>>, %arg3: memref<36x8xbf16, #tpu.memory_space<vmem>>, %arg4: memref<1x8xf32, #tpu.memory_space<vmem>>, %arg5: memref<1x16x16x8xf32, #tpu.memory_space<vmem>>) attributes {dimension_semantics = [#tpu.dimension_semantics<parallel>, #tpu.dimension_semantics<parallel>], iteration_bounds = array<i64: 2, 1>, scalar_prefetch = 0 : i64, scratch_operands = 0 : i64, tpu.core_type = #tpu.core_type<tc>, window_params = [{transform_indices = @transform_0, window_bounds = array<i64: 1, 18, 18, 4>}, {pipeline_mode = #tpu.pipeline_mode<synchronous>, transform_indices = @transform_1, window_bounds = array<i64: 36, 8>}, {pipeline_mode = #tpu.pipeline_mode<synchronous>, transform_indices = @transform_2, window_bounds = array<i64: 1, 8>}, {transform_indices = @transform_3, window_bounds = array<i64: 1, 16, 16, 8>}]} {
    %c16_i32 = arith.constant 16 : i32
    %0 = arith.muli %arg1, %c16_i32 : i32
    %1 = tpu.assume_multiple %0, 16 : i32
    %c0 = arith.constant 0 : index
    %2 = arith.index_cast %1 : i32 to index
    %c0_0 = arith.constant 0 : index
    %c0_1 = arith.constant 0 : index
    %3 = vector.load %arg2[%c0, %2, %c0_0, %c0_1] : memref<1x18x18x4xbf16, #tpu.memory_space<vmem>>, vector<1x18x18x4xbf16>
    %4 = vector.shape_cast %3 : vector<1x18x18x4xbf16> to vector<18x18x4xbf16>
    %5 = vector.extract_strided_slice %4 {offsets = [0, 0, 0], sizes = [16, 16, 4], strides = [1, 1, 1]} : vector<18x18x4xbf16> to vector<16x16x4xbf16>
    %6 = vector.extract_strided_slice %4 {offsets = [0, 1, 0], sizes = [16, 16, 4], strides = [1, 1, 1]} : vector<18x18x4xbf16> to vector<16x16x4xbf16>
    %7 = vector.extract_strided_slice %4 {offsets = [0, 2, 0], sizes = [16, 16, 4], strides = [1, 1, 1]} : vector<18x18x4xbf16> to vector<16x16x4xbf16>
    %8 = vector.extract_strided_slice %4 {offsets = [1, 0, 0], sizes = [16, 16, 4], strides = [1, 1, 1]} : vector<18x18x4xbf16> to vector<16x16x4xbf16>
    %9 = vector.extract_strided_slice %4 {offsets = [1, 1, 0], sizes = [16, 16, 4], strides = [1, 1, 1]} : vector<18x18x4xbf16> to vector<16x16x4xbf16>
    %10 = vector.extract_strided_slice %4 {offsets = [1, 2, 0], sizes = [16, 16, 4], strides = [1, 1, 1]} : vector<18x18x4xbf16> to vector<16x16x4xbf16>
    %11 = vector.extract_strided_slice %4 {offsets = [2, 0, 0], sizes = [16, 16, 4], strides = [1, 1, 1]} : vector<18x18x4xbf16> to vector<16x16x4xbf16>
    %12 = vector.extract_strided_slice %4 {offsets = [2, 1, 0], sizes = [16, 16, 4], strides = [1, 1, 1]} : vector<18x18x4xbf16> to vector<16x16x4xbf16>
    %13 = vector.extract_strided_slice %4 {offsets = [2, 2, 0], sizes = [16, 16, 4], strides = [1, 1, 1]} : vector<18x18x4xbf16> to vector<16x16x4xbf16>
    %14 = tpu.concatenate %5, %6, %7, %8, %9, %10, %11, %12, %13 in 2 : vector<16x16x4xbf16>, vector<16x16x4xbf16>, vector<16x16x4xbf16>, vector<16x16x4xbf16>, vector<16x16x4xbf16>, vector<16x16x4xbf16>, vector<16x16x4xbf16>, vector<16x16x4xbf16>, vector<16x16x4xbf16> -> vector<16x16x36xbf16>
    %15 = vector.shape_cast %14 : vector<16x16x36xbf16> to vector<256x36xbf16>
    %c0_2 = arith.constant 0 : index
    %c0_3 = arith.constant 0 : index
    %16 = vector.load %arg3[%c0_2, %c0_3] : memref<36x8xbf16, #tpu.memory_space<vmem>>, vector<36x8xbf16>
    %cst = arith.constant dense<0.000000e+00> : vector<256x8xf32>
    %17 = tpu.matmul %15, %16, %cst {dimension_numbers = #tpu.dot_dimension_numbers<[1], [0], [0], [1], [0, 0, 1, 1], [], []>} : vector<256x36xbf16>, vector<36x8xbf16>, vector<256x8xf32> -> vector<256x8xf32>
    %c0_4 = arith.constant 0 : index
    %c0_5 = arith.constant 0 : index
    %18 = vector.load %arg4[%c0_4, %c0_5] : memref<1x8xf32, #tpu.memory_space<vmem>>, vector<1x8xf32>
    %19 = vector.broadcast %18 : vector<1x8xf32> to vector<256x8xf32>
    %20 = arith.addf %17, %19 : vector<256x8xf32>
    %cst_6 = arith.constant 0.000000e+00 : f32
    %21 = vector.broadcast %cst_6 : f32 to vector<256x8xf32>
    %22 = arith.cmpf ogt, %20, %21 : vector<256x8xf32>
    %cst_7 = arith.constant 2.000000e-01 : f32
    %23 = vector.broadcast %cst_7 : f32 to vector<256x8xf32>
    %24 = arith.mulf %23, %20 : vector<256x8xf32>
    %25 = arith.select %22, %20, %24 : vector<256x8xi1>, vector<256x8xf32>
    %26 = vector.shape_cast %25 : vector<256x8xf32> to vector<1x16x16x8xf32>
    %c0_8 = arith.constant 0 : index
    %c0_9 = arith.constant 0 : index
    %c0_10 = arith.constant 0 : index
    %c0_11 = arith.constant 0 : index
    %27 = vector.load %arg5[%c0_8, %c0_9, %c0_10, %c0_11] : memref<1x16x16x8xf32, #tpu.memory_space<vmem>>, vector<1x16x16x8xf32>
    tpu.vector_store %arg5[%c0_8, %c0_9, %c0_10, %c0_11], %26 {strides = array<i32>} : memref<1x16x16x8xf32, #tpu.memory_space<vmem>>, vector<1x16x16x8xf32>,
    return
  }
  func.func @transform_0(%arg0: i32, %arg1: i32) -> (i32, i32, i32, i32) {
    %c0_i32 = arith.constant 0 : i32
    %c0_i32_0 = arith.constant 0 : i32
    %c0_i32_1 = arith.constant 0 : i32
    %c0_i32_2 = arith.constant 0 : i32
    return %arg0, %c0_i32, %c0_i32_0, %c0_i32_1 : i32, i32, i32, i32
  }
  func.func @transform_1(%arg0: i32, %arg1: i32) -> (i32, i32) {
    %c0_i32 = arith.constant 0 : i32
    %c0_i32_0 = arith.constant 0 : i32
    %c0_i32_1 = arith.constant 0 : i32
    return %c0_i32, %c0_i32_0 : i32, i32
  }
  func.func @transform_2(%arg0: i32, %arg1: i32) -> (i32, i32) {
    %c0_i32 = arith.constant 0 : i32
    %c0_i32_0 = arith.constant 0 : i32
    %c0_i32_1 = arith.constant 0 : i32
    return %c0_i32, %c0_i32_0 : i32, i32
  }
  func.func @transform_3(%arg0: i32, %arg1: i32) -> (i32, i32, i32, i32) {
    %c0_i32 = arith.constant 0 : i32
    %c0_i32_0 = arith.constant 0 : i32
    %c0_i32_1 = arith.constant 0 : i32
    return %arg0, %arg1, %c0_i32, %c0_i32_0 : i32, i32, i32, i32
  }
}

</mosaic_0001>

<bundles_post_ra>
// kernel: tpu_custom_call.1
= control target key start
LH: loop header
LB: loop body
LE: loop exit
PB: predicated region body
PF: predicated region fallthrough
CT: control target
= control target key end

     0   :  { %s1890_s12 = smov 0   ;;  %s1892_s13 = smov 0   ;;  %s2693_s0 = inlined_call_operand.vmem [shape: bf16[2,18,18,4], index: 0, kind: input, shape index: {}]   ;;  %s2694_s1 = inlined_call_operand.vmem [shape: bf16[36,8], index: 1, kind: input, shape index: {}]   ;;  %s2695_s2 = inlined_call_operand.vmem [shape: f32[1,8], index: 2, kind: input, shape index: {}]   ;;  %s2696_s3 = inlined_call_operand.vmem [shape: f32[2,16,16,8], index: 3, kind: output, shape index: {}]  }
   0x1   :  { %s1894_s14 = smov 0  }
   0x2 LB: > { %s25_s15 = sadd.s32 1, %s1856_s13  ;;  %p1637_p0 = scmp.ge.s32.totalorder %s1860_s14, 1  ;;  %s1860_s14 = sphi %s1894_s14, %s13_s14   ;;  %s1856_s13 = sphi %s1892_s13, %s2698_s13   ;;  %s1852_s12 = sphi %s1890_s12, %s2697_s12  }
   0x3   : > { %p27_p1 = scmp.ge.s32.totalorder %s25_s15, 2  ;;  %p151_p2 = scmp.lt.s32.totalorder %s1860_s14, 3 }
   0x5   : > { %s2700_s15 = smov (%p27_p1, %s25_s15), 0  ;;  %p152_p3 = pnand %p1637_p0, %p151_p2 }
   0x6   : > { %p180_p4 = scmp.lt.s32.totalorder (!%p152_p3), %s1852_s12, 1  ;;  %vm608_vm0 = vcmask (!%p152_p3), 1046528   ;;  %s1862_s20 = smov (!%p152_p3), 12   ;;  %vm383_vm1 = vsmask.f32 (!%p152_p3), 7424  ;;  %vm1251_vm2 = vcmask (!%p152_p3), 1041408  }
   0x7   : > { %155 = sbr.rel (%p152_p3) target bundleno = 611 (0x263), region = 32  ;;  %s1863_s21 = smov (!%p152_p3), 8   ;;  %vm927_vm3 = vcmask (!%p152_p3), 31744   ;;  %vm960_vm4 = vcmask (!%p152_p3), 64512   ;;  %vm1026_vm5 = vcmask (!%p152_p3), 130048   ;;  %vm993_vm6 = vcmask (!%p152_p3), 97280  }
   0x8   : > { %s1864_s22 = smov (!%p152_p3), 4   ;;  %s1865_s23 = smov (!%p152_p3), 16   ;;  %vm1059_vm7 = vcmask (!%p152_p3), 162816   ;;  %vm1092_vm8 = vcmask (!%p152_p3), 195584   ;;  %vm1125_vm9 = vcmask (!%p152_p3), 228352   ;;  %vm1158_vm10 = vcmask (!%p152_p3), 261120  }
   0x9   : > { %s1866_s24 = smov (!%p152_p3), 20   ;;  %s1867_s25 = smov (!%p152_p3), 24   ;;  %vm1218_vm11 = vcmask (!%p152_p3), 293888  }
   0xa   : > { %s1868_s30 = smov (!%p152_p3), 28   ;;  %s1869_s6 = smov (!%p152_p3), 32  }
   0xe   : > { %s2702_s12 = smov (!%p180_p4, %s1852_s12), 1 }
   0xf   : > { %s1765_s16 = smul.u32 216, %s2702_s12  ;;  %s1699_s9 = sshll.u32 %s2702_s12, 8 }
  0x11   : > { %s1914_s19 = scalar_lea.vmem %s2693_s0, %s1765_s16  ;;  %s2588_s16 = scalar_lea.vmem %s2696_s3, %s1699_s9 }
  0x12   : > { %v1917_v0 = vld [vmem:[%s1914_s19 + $0x6c] sm:$0xff]   ;;  %v1927_v2 = vld [vmem:[%s1914_s19 + $0x60] sm:$0xff]   ;;  %v1801_v3 = vld [vmem:[%s1914_s19 + $0x68] ss:$0 sps:$4 sm:$0x11]  }
  0x13   : > { %v1920_v1 = vld [vmem:[%s1914_s19 + $0xc] sm:$0xff]   ;;  %710 = vrot.lane.b32.xlu1 %v1917_v0, %s1862_s20  ;;  %v1931_v4 = vld [vmem:[%s1914_s19] sm:$0xff]   ;;  %v636_v5 = vrot.slane %v1917_v0, 1  ;;  %v633_v6 = vrot.slane %v1927_v2, 1  ;;  %v634_v7 = vrot.slane %v1801_v3, 1  ;;  %v493_v26 = vshrl.u32 %v1917_v0, 16 }
  0x14   : > { %694 = vrot.lane.b32.xlu0 %v1920_v1, %s1862_s20  ;;  %v1803_v8 = vld [vmem:[%s1914_s19 + $0x8] ss:$0 sps:$4 sm:$0x11]   ;;  %v612_v9 = vrot.slane %v1920_v1, 1  ;;  %v609_v10 = vrot.slane %v1931_v4, 1  ;;  %v397_v16 = vshrl.u32 %v1920_v1, 16 }
  0x15   : > { %v1804_v11 = vld [vmem:[%s1914_s19 + $0x74] ss:$0 sps:$4 sm:$0x11]   ;;  %v1940_v12 = vsel %vm608_vm0, %v633_v6, %v634_v7  ;;  %v610_v13 = vrot.slane %v1803_v8, 1  ;;  %v399_v17 = vshll.u32 %v1920_v1, 16  ;;  %v385_v18 = vshrl.u32 %v1931_v4, 16 }
  0x16   : > { %v1805_v14 = vld [vmem:[%s1914_s19 + $0x14] ss:$0 sps:$4 sm:$0x11]   ;;  %v637_v15 = vrot.slane %v1804_v11, 1  ;;  %v387_v22 = vshll.u32 %v1931_v4, 16  ;;  %v392_v25 = vshll.u32 %v1803_v8, 16 }
  0x17   : > { %673 = vrot.lane.b32.xlu1 %v1940_v12, %s1863_s21  ;;  %v611_v19 = vsel %vm608_vm0, %v609_v10, %v610_v13  ;;  %v613_v20 = vrot.slane %v1805_v14, 1  ;;  %v404_v21 = vshll.u32 %v1805_v14, 16  ;;  %v401_v24 = vrot.slane %v399_v17, 1  ;;  %v1962_v39 = vld [vmem:[%s1914_s19 + $0x78] sm:$0xff]   ;;  %v2010_v10 = vld [vmem:[%s1914_s19 + $0x84] sm:$0xff]  }
  0x18   : > { %657 = vrot.lane.b32.xlu0 %v611_v19, %s1863_s21  ;;  %v1952_v23 = vsel %vm608_vm0, %v636_v5, %v637_v15  ;;  %v389_v29 = vrot.slane %v387_v22, 1  ;;  %v495_v30 = vshll.u32 %v1917_v0, 16  ;;  %v394_v32 = vrot.slane %v392_v25, 1  ;;  %v1968_v46 = vld [vmem:[%s1914_s19 + $0x18] sm:$0xff]   ;;  %v2020_v14 = vld [vmem:[%s1914_s19 + $0x24] sm:$0xff]  }
  0x19   : > { %v614_v27 = vsel %vm608_vm0, %v612_v9, %v613_v20  ;;  %v406_v28 = vrot.slane %v404_v21, 1  ;;  %v402_v31 = vor.u32 %v401_v24, %v397_v16  ;;  %v500_v33 = vshll.u32 %v1804_v11, 16  ;;  %v1808_v47 = vld [vmem:[%s1914_s19 + $0x80] ss:$0 sps:$4 sm:$0x11]  }
  0x1a   : > { %v481_v34 = vshrl.u32 %v1927_v2, 16  ;;  %v390_v35 = vor.u32 %v389_v29, %v385_v18  ;;  %v497_v36 = vrot.slane %v495_v30, 1  ;;  %v483_v37 = vshll.u32 %v1927_v2, 16  ;;  %v1809_v52 = vld [vmem:[%s1914_s19 + $0x20] ss:$0 sps:$4 sm:$0x11]  }
  0x1b   : > { %675 = vrot.lane.b32.xlu1 %v1952_v23, %s1863_s21  ;;  %v488_v38 = vshll.u32 %v1801_v3, 16  ;;  %v407_v40 = vsel %vm383_vm1, %v402_v31, %v406_v28  ;;  %v502_v41 = vrot.slane %v500_v33, 1  ;;  %v507_v50 = vshll.u32 %v1962_v39, 16  ;;  %v1812_v15 = vld [vmem:[%s1914_s19 + $0x8c] ss:$0 sps:$4 sm:$0x11]  }
  0x1c   : > { %659 = vrot.lane.b32.xlu0 %v614_v27, %s1863_s21  ;;  %v395_v42 = vsel %vm383_vm1, %v390_v35, %v394_v32  ;;  %v498_v43 = vor.u32 %v497_v36, %v493_v26  ;;  %v485_v44 = vrot.slane %v483_v37, 1  ;;  %v411_v53 = vshll.u32 %v1968_v46, 16  ;;  %v1813_v18 = vld [vmem:[%s1914_s19 + $0x2c] ss:$0 sps:$4 sm:$0x11]   ;;  %v1826_v22 = vld [vmem:[%s2694_s1] sm:$0xff]  }
  0x1d   : > { %v490_v45 = vrot.slane %v488_v38, 1  ;;  %v505_v54 = vshrl.u32 %v1962_v39, 16  ;;  %v509_v55 = vrot.slane %v507_v50, 1  ;;  %v512_v56 = vshll.u32 %v1808_v47, 16  ;;  %1719 = vmatprep.subr.bf16.mxu0 %v1826_v22  ;;  %1757 = vmatprep.subr.bf16.mxu1 %v1826_v22 }
  0x1e   : > { %v1973_v48 = vsel %vm383_vm1, %v498_v43, %v502_v41  ;;  %v486_v49 = vor.u32 %v485_v44, %v481_v34  ;;  %v409_v57 = vshrl.u32 %v1968_v46, 16  ;;  %v413_v58 = vrot.slane %v411_v53, 1  ;;  %1720 = vmatpush3.bf16.msra.mxu0 %v1826_v22  ;;  %1760 = vmatpush3.bf16.msra.mxu1 %v1826_v22  ;;  %v1830_v32 = vld [vmem:[%s2694_s1 + $0x10] ss:$0 sps:$4 sm:$0x33]  }
  0x1f   : > { %578 = vrot.lane.b32.xlu1 %v407_v40, %s1864_s22  ;;  %v416_v59 = vshll.u32 %v1809_v52, 16  ;;  %v510_v60 = vor.u32 %v509_v55, %v505_v54  ;;  %v514_v61 = vrot.slane %v512_v56, 1  ;;  %v639_v6 = vrot.slane %v1962_v39, 1  ;;  %v2076_v43 = vld [vmem:[%s1914_s19 + $0x90] sm:$0xff]  }
  0x20   : > { %576 = vrot.lane.b32.xlu0 %v395_v42, %s1864_s22  ;;  %v1978_v51 = vsel %vm383_vm1, %v486_v49, %v490_v45  ;;  %v414_v62 = vor.u32 %v413_v58, %v409_v57  ;;  %v640_v7 = vrot.slane %v1808_v47, 1  ;;  %v615_v8 = vrot.slane %v1968_v46, 1  ;;  %v2081_v44 = vld [vmem:[%s1914_s19 + $0x30] sm:$0xff]   ;;  %v1816_v45 = vld [vmem:[%s1914_s19 + $0x98] ss:$0 sps:$4 sm:$0x11]  }
  0x21   : > { %v418_v63 = vrot.slane %v416_v59, 1  ;;  %v1995_v3 = vsel %vm383_vm1, %v510_v60, %v514_v61  ;;  %v616_v9 = vrot.slane %v1809_v52, 1  ;;  %v519_v16 = vshll.u32 %v2010_v10, 16  ;;  %v1817_v49 = vld [vmem:[%s1914_s19 + $0x38] ss:$0 sps:$4 sm:$0x11]  }
  0x22   : > { %v2013_v11 = vsel %vm608_vm0, %v639_v6, %v640_v7  ;;  %v517_v17 = vshrl.u32 %v2010_v10, 16  ;;  %v524_v19 = vshll.u32 %v1812_v15, 16  ;;  %v423_v20 = vshll.u32 %v2020_v14, 16 }
  0x23   : > { %594 = vrot.lane.b32.xlu1 %v1973_v48, %s1864_s22  ;;  %v1999_v5 = vsel %vm383_vm1, %v414_v62, %v418_v63  ;;  %v2017_v13 = vsel %vm608_vm0, %v615_v8, %v616_v9  ;;  %v521_v21 = vrot.slane %v519_v16, 1  ;;  %v421_v24 = vshrl.u32 %v2020_v14, 16  ;;  %v2110_v9 = vld [vmem:[%s1914_s19 + $0x9c] sm:$0xff]  }
  0x24   : > { %592 = vrot.lane.b32.xlu0 %v1978_v51, %s1864_s22  ;;  %v425_v25 = vrot.slane %v423_v20, 1  ;;  %v428_v26 = vshll.u32 %v1813_v18, 16  ;;  %v526_v29 = vrot.slane %v524_v19, 1  ;;  %v1253_v34 = vsel %vm1251_vm2, %v1830_v32, 0 }
  0x25   : > { %v522_v28 = vor.u32 %v521_v21, %v517_v17  ;;  %v642_v36 = vrot.slane %v2010_v10, 1  ;;  %v643_v37 = vrot.slane %v1812_v15, 1  ;;  %v618_v38 = vrot.slane %v2020_v14, 1  ;;  %v1820_v15 = vld [vmem:[%s1914_s19 + $0xa4] ss:$0 sps:$4 sm:$0x11]  }
  0x26   : > { %v426_v30 = vor.u32 %v425_v25, %v421_v24  ;;  %v430_v31 = vrot.slane %v428_v26, 1  ;;  %v531_v47 = vshll.u32 %v2076_v43, 16  ;;  %v435_v50 = vshll.u32 %v2081_v44, 16  ;;  %v1821_v17 = vld [vmem:[%s1914_s19 + $0x44] ss:$0 sps:$4 sm:$0x11]  }
  0x27   : > { %712 = vrot.lane.b32.xlu1 %v1962_v39, %s1862_s20  ;;  %v527_v33 = vsel %vm383_vm1, %v522_v28, %v526_v29  ;;  %v644_v41 = vsel %vm608_vm0, %v642_v36, %v643_v37  ;;  %v529_v52 = vshrl.u32 %v2076_v43, 16  ;;  %v536_v54 = vshll.u32 %v1816_v45, 16 }
  0x28   : > { %696 = vrot.lane.b32.xlu0 %v1968_v46, %s1862_s20  ;;  %v431_v35 = vsel %vm383_vm1, %v426_v30, %v430_v31  ;;  %v533_v53 = vrot.slane %v531_v47, 1  ;;  %v433_v55 = vshrl.u32 %v2081_v44, 16  ;;  %v437_v56 = vrot.slane %v435_v50, 1 }
  0x29   : > { %v440_v57 = vshll.u32 %v1817_v49, 16  ;;  %v538_v59 = vrot.slane %v536_v54, 1  ;;  %v621_v6 = vrot.slane %v2081_v44, 1  ;;  %v622_v7 = vrot.slane %v1817_v49, 1 }
  0x2a   : > { %v534_v58 = vor.u32 %v533_v53, %v529_v52  ;;  %v438_v60 = vor.u32 %v437_v56, %v433_v55  ;;  %v543_v16 = vshll.u32 %v2110_v9, 16  ;;  %v541_v19 = vshrl.u32 %v2110_v9, 16  ;;  %v2176_v56 = vld [vmem:[%s1914_s19 + $0xa8] sm:$0xff]  }
  0x2b   : > { %757 = vrot.lane.b32.xlu1 %v1973_v48, %s1865_s23  ;;  %v442_v61 = vrot.slane %v440_v57, 1  ;;  %v548_v21 = vshll.u32 %v1820_v15, 16  ;;  %v452_v25 = vshll.u32 %v1821_v17, 16  ;;  %v648_v36 = vrot.slane %v2110_v9, 1 }
  0x2c   : > { %741 = vrot.lane.b32.xlu0 %v407_v40, %s1865_s23  ;;  %v619_v40 = vrot.slane %v1813_v18, 1  ;;  %v539_v62 = vsel %vm383_vm1, %v534_v58, %v538_v59  ;;  %v545_v20 = vrot.slane %v543_v16, 1  ;;  %v649_v37 = vrot.slane %v1820_v15, 1  ;;  %v2182_v58 = vld [vmem:[%s1914_s19 + $0x48] sm:$0xff]  }
  0x2d   : > { %v443_v63 = vsel %vm383_vm1, %v438_v60, %v442_v61  ;;  %v454_v29 = vrot.slane %v452_v25, 1  ;;  %v1824_v60 = vld [vmem:[%s1914_s19 + $0xb0] ss:$0 sps:$4 sm:$0x11]   ;;  %v555_v61 = vshll.u32 %v2176_v56, 16  ;;  %v457_v15 = vshrl.u32 %v2182_v58, 16 }
  0x2e   : > { %v620_v42 = vsel %vm608_vm0, %v618_v38, %v619_v40  ;;  %v546_v26 = vor.u32 %v545_v20, %v541_v19 }
  0x2f   : > { %759 = vrot.lane.b32.xlu1 %v1995_v3, %s1865_s23 }
  0x30   : > { %743 = vrot.lane.b32.xlu0 %v1999_v5, %s1865_s23 }
  0x33   : > { %792 = vrot.lane.b32.xlu1 %v1952_v23, %s1866_s24 }
  0x34   : > { %776 = vrot.lane.b32.xlu0 %v614_v27, %s1866_s24  ;;  %v1827_v27 = vld [vmem:[%s2694_s1 + $0x8] sm:$0xff]  }
  0x35   : > { %1721 = vmatprep.subr.bf16.mxu0 %v1827_v27  ;;  %1758 = vmatprep.subr.bf16.mxu1 %v1827_v27 }
  0x36   : > { %1722 = vmatpush3.bf16.msra.mxu0 %v1827_v27  ;;  %1761 = vmatpush3.bf16.msra.mxu1 %v1827_v27  ;;  %v550_v27 = vrot.slane %v548_v21, 1 }
  0x37   : > { %794 = vrot.lane.b32.xlu1 %v2013_v11, %s1866_s24  ;;  %1763 = vmatprep.subr.msk.bf16.mxu0 %vm1251_vm2, %v1830_v32 }
  0x38   : > { %778 = vrot.lane.b32.xlu0 %v2017_v13, %s1866_s24  ;;  %1764 = vmatprep.subr.msk.bf16.mxu1 %vm1251_vm2, %v1830_v32  ;;  %v551_v31 = vsel %vm383_vm1, %v546_v26, %v550_v27 }
  0x3a   : > { %1724 = vmatpush3.bf16.msra.mxu0 %v1253_v34  ;;  %1762 = vmatpush3.bf16.msra.mxu1 %v1253_v34 }
  0x3b   : > { %829 = vrot.lane.b32.xlu1 %v1962_v39, %s1867_s25 }
  0x3c   : > { %813 = vrot.lane.b32.xlu0 %v1968_v46, %s1867_s25 }
  0x3f   : > { %831 = vrot.lane.b32.xlu1 %v2010_v10, %s1867_s25 }
  0x40   : > { %815 = vrot.lane.b32.xlu0 %v2020_v14, %s1867_s25 }
  0x43   : > { %876 = vrot.lane.b32.xlu1 %v1995_v3, %s1868_s30 }
  0x44   : > { %860 = vrot.lane.b32.xlu0 %v1999_v5, %s1868_s30 }
  0x47   : > { %878 = vrot.lane.b32.xlu1 %v527_v33, %s1868_s30 }
  0x48   : > { %862 = vrot.lane.b32.xlu0 %v431_v35, %s1868_s30 }
  0x4b   : > { %911 = vrot.lane.b32.xlu1 %v2013_v11, %s1869_s6 }
  0x4c   : > { %895 = vrot.lane.b32.xlu0 %v2017_v13, %s1869_s6 }
  0x4f   : > { %596 = vrot.lane.b32.xlu1 %v1995_v3, %s1864_s22  ;;  %v645_v3 = vrot.slane %v2076_v43, 1 }
  0x50   : > { %580 = vrot.lane.b32.xlu0 %v1999_v5, %s1864_s22  ;;  %v646_v5 = vrot.slane %v1816_v45, 1  ;;  %v650_v45 = vsel %vm608_vm0, %v648_v36, %v649_v37  ;;  %v651_v36 = vrot.slane %v2176_v56, 1  ;;  %v652_v37 = vrot.slane %v1824_v60, 1 }
  0x52   : > { %v647_v8 = vsel %vm608_vm0, %v645_v3, %v646_v5  ;;  %v459_v3 = vshll.u32 %v2182_v58, 16 }
  0x53   : > { %913 = vrot.lane.b32.xlu1 %v644_v41, %s1869_s6 }
  0x54   : > { %897 = vrot.lane.b32.xlu0 %v620_v42, %s1869_s6  ;;  %v461_v16 = vrot.slane %v459_v3, 1  ;;  %v2238_v3 = vld [vmem:[%s1914_s19 + $0xb4] sm:$0xff]  }
  0x57   : > { %598 = vrot.lane.b32.xlu1 %v527_v33, %s1864_s22 }
  0x58   : > { %582 = vrot.lane.b32.xlu0 %v431_v35, %s1864_s22 }
  0x5b   : > { %677 = vrot.lane.b32.xlu1 %v2013_v11, %s1863_s21  ;;  %v623_v11 = vsel %vm608_vm0, %v621_v6, %v622_v7  ;;  %v553_v6 = vshrl.u32 %v2176_v56, 16  ;;  %v557_v7 = vrot.slane %v555_v61, 1 }
  0x5c   : > { %661 = vrot.lane.b32.xlu0 %v2017_v13, %s1863_s21  ;;  %v2115_v13 = vld [vmem:[%s1914_s19 + $0x3c] sm:$0xff]  }
  0x5d   : > { %v447_v18 = vshll.u32 %v2115_v13, 16  ;;  %v445_v22 = vshrl.u32 %v2115_v13, 16  ;;  %v624_v40 = vrot.slane %v2115_v13, 1  ;;  %v558_v19 = vor.u32 %v557_v7, %v553_v6 }
  0x5f   : > { %679 = vrot.lane.b32.xlu1 %v644_v41, %s1863_s21  ;;  %v449_v24 = vrot.slane %v447_v18, 1 }
  0x60   : > { %663 = vrot.lane.b32.xlu0 %v620_v42, %s1863_s21 }
  0x61   : > { %v450_v28 = vor.u32 %v449_v24, %v445_v22  ;;  %v462_v22 = vor.u32 %v461_v16, %v457_v15 }
  0x63   : > { %714 = vrot.lane.b32.xlu1 %v2010_v10, %s1862_s20 }
  0x64   : > { %698 = vrot.lane.b32.xlu0 %v2020_v14, %s1862_s20 }
  0x67   : > { %716 = vrot.lane.b32.xlu1 %v2076_v43, %s1862_s20 }
  0x68   : > { %700 = vrot.lane.b32.xlu0 %v2081_v44, %s1862_s20 }
  0x6b   : > { %761 = vrot.lane.b32.xlu1 %v527_v33, %s1865_s23  ;;  %v455_v33 = vsel %vm383_vm1, %v450_v28, %v454_v29 }
  0x6c   : > { %745 = vrot.lane.b32.xlu0 %v431_v35, %s1865_s23 }
  0x6f   : > { %763 = vrot.lane.b32.xlu1 %v539_v62, %s1865_s23 }
  0x70   : > { %747 = vrot.lane.b32.xlu0 %v443_v63, %s1865_s23 }
  0x73   : > { %796 = vrot.lane.b32.xlu1 %v644_v41, %s1866_s24  ;;  %v625_v41 = vrot.slane %v1821_v17, 1 }
  0x74   : > { %780 = vrot.lane.b32.xlu0 %v620_v42, %s1866_s24 }
  0x75   : > { %v2161_v49 = vsel %vm608_vm0, %v624_v40, %v625_v41 }
  0x77   : > { %798 = vrot.lane.b32.xlu1 %v647_v8, %s1866_s24 }
  0x78   : > { %782 = vrot.lane.b32.xlu0 %v623_v11, %s1866_s24 }
  0x7b   : > { %833 = vrot.lane.b32.xlu1 %v2076_v43, %s1867_s25 }
  0x7c   : > { %817 = vrot.lane.b32.xlu0 %v2081_v44, %s1867_s25 }
  0x7f   : > { %835 = vrot.lane.b32.xlu1 %v2110_v9, %s1867_s25 }
  0x80   : > { %819 = vrot.lane.b32.xlu0 %v2115_v13, %s1867_s25 }
  0x83   : > { %880 = vrot.lane.b32.xlu1 %v539_v62, %s1868_s30 }
  0x84   : > { %864 = vrot.lane.b32.xlu0 %v443_v63, %s1868_s30 }
  0x85   : > { %v2134_v30 = vpop.permute.xlu1 %710 }
  0x86   : > { %v2138_v32 = vpop.permute.xlu0 %694 }
  0x87   : > { %882 = vrot.lane.b32.xlu1 %v551_v31, %s1868_s30 }
  0x88   : > { %866 = vrot.lane.b32.xlu0 %v455_v33, %s1868_s30 }
  0x89   : > { %v2143_v34 = vpop.permute.xlu1 %673 }
  0x8a   : > { %v2145_v35 = vpop.permute.xlu0 %657 }
  0x8b   : > { %915 = vrot.lane.b32.xlu1 %v647_v8, %s1869_s6 }
  0x8c   : > { %899 = vrot.lane.b32.xlu0 %v623_v11, %s1869_s6 }
  0x8d   : > { %v2150_v38 = vpop.permute.xlu1 %675 }
  0x8e   : > { %v2153_v42 = vpop.permute.xlu0 %659 }
  0x8f   : > { %600 = vrot.lane.b32.xlu1 %v539_v62, %s1864_s22 }
  0x90   : > { %584 = vrot.lane.b32.xlu0 %v443_v63, %s1864_s22  ;;  %v1825_v63 = vld [vmem:[%s1914_s19 + $0x50] ss:$0 sps:$4 sm:$0x11]  }
  0x91   : > { %v2158_v47 = vpop.permute.xlu1 %578  ;;  %v464_v17 = vshll.u32 %v1825_v63, 16  ;;  %v628_v40 = vrot.slane %v1825_v63, 1 }
  0x92   : > { %v577_v50 = vpop.permute.xlu0 %576 }
  0x93   : > { %917 = vrot.lane.b32.xlu1 %v650_v45, %s1869_s6  ;;  %v466_v24 = vrot.slane %v464_v17, 1  ;;  %v929_v6 = vsel %vm927_vm3, %v1931_v4, %v577_v50 }
  0x94   : > { %901 = vrot.lane.b32.xlu0 %v2161_v49, %s1869_s6  ;;  %v962_v4 = vsel %vm960_vm4, %v929_v6, %v2145_v35  ;;  %v2267_v35 = vld [vmem:[%s1914_s19 + $0x5c] ss:$0 sps:$4 sm:$0x11]  }
  0x95   : > { %v2166_v52 = vpop.permute.xlu1 %594  ;;  %v2219_v28 = vsel %vm383_vm1, %v462_v22, %v466_v24  ;;  %v565_v22 = vshrl.u32 %v2238_v3, 16 }
  0x96   : > { %v593_v53 = vpop.permute.xlu0 %592 }
  0x97   : > { %602 = vrot.lane.b32.xlu1 %v551_v31, %s1864_s22  ;;  %v945_v41 = vsel %vm927_vm3, %v1927_v2, %v593_v53 }
  0x98   : > { %586 = vrot.lane.b32.xlu0 %v455_v33, %s1864_s22  ;;  %v978_v53 = vsel %vm960_vm4, %v945_v41, %v2143_v34  ;;  %v567_v34 = vshll.u32 %v2238_v3, 16 }
  0x99   : > { %v2170_v54 = vpop.permute.xlu1 %712  ;;  %v1011_v50 = vsel %vm993_vm6, %v978_v53, %v2134_v30  ;;  %v476_v53 = vshll.u32 %v2267_v35, 16 }
  0x9a   : > { %v2172_v55 = vpop.permute.xlu0 %696 }
  0x9b   : > { %681 = vrot.lane.b32.xlu1 %v647_v8, %s1863_s21  ;;  %v560_v8 = vshll.u32 %v1824_v60, 16  ;;  %v2235_v60 = vsel %vm608_vm0, %v651_v36, %v652_v37  ;;  %v569_v36 = vrot.slane %v567_v34, 1 }
  0x9c   : > { %665 = vrot.lane.b32.xlu0 %v623_v11, %s1863_s21 }
  0x9d   : > { %v2179_v57 = vpop.permute.xlu1 %757  ;;  %v562_v20 = vrot.slane %v560_v8, 1 }
  0x9e   : > { %v2184_v59 = vpop.permute.xlu0 %741  ;;  %v1044_v16 = vsel %vm1026_vm5, %v1011_v50, %v2179_v57 }
  0x9f   : > { %683 = vrot.lane.b32.xlu1 %v650_v45, %s1863_s21  ;;  %v2215_v26 = vsel %vm383_vm1, %v558_v19, %v562_v20  ;;  %v995_v19 = vsel %vm993_vm6, %v962_v4, %v2138_v32  ;;  %v947_v32 = vsel %vm927_vm3, %v1917_v0, %v2166_v52  ;;  %v931_v0 = vsel %vm927_vm3, %v1920_v1, %v2158_v47 }
  0xa0   : > { %667 = vrot.lane.b32.xlu0 %v2161_v49, %s1863_s21  ;;  %v1028_v57 = vsel %vm1026_vm5, %v995_v19, %v2184_v59  ;;  %v570_v4 = vor.u32 %v569_v36, %v565_v22  ;;  %v964_v47 = vsel %vm960_vm4, %v931_v0, %v2153_v42 }
  0xa1   : > { %v2191_v62 = vpop.permute.xlu1 %759 }
  0xa2   : > { %v2195_v5 = vpop.permute.xlu0 %743 }
  0xa3   : > { %718 = vrot.lane.b32.xlu1 %v2110_v9, %s1862_s20 }
  0xa4   : > { %702 = vrot.lane.b32.xlu0 %v2115_v13, %s1862_s20 }
  0xa5   : > { %v793_v11 = vpop.permute.xlu1 %792 }
  0xa6   : > { %v2203_v18 = vpop.permute.xlu0 %776  ;;  %v1077_v20 = vsel %vm1059_vm7, %v1044_v16, %v793_v11  ;;  %v478_v16 = vrot.slane %v476_v53, 1  ;;  %v1833_v53 = vld [vmem:[%s1914_s19 + $0xc0] sm:$0xff]  }
  0xa7   : > { %720 = vrot.lane.b32.xlu1 %v2176_v56, %s1862_s20  ;;  %v1061_v11 = vsel %vm1059_vm7, %v1028_v57, %v2203_v18 }
  0xa8   : > { %704 = vrot.lane.b32.xlu0 %v2182_v58, %s1862_s20 }
  0xa9   : > { %v2209_v21 = vpop.permute.xlu1 %794 }
  0xaa   : > { %v2211_v25 = vpop.permute.xlu0 %778 }
  0xab   : > { %765 = vrot.lane.b32.xlu1 %v551_v31, %s1865_s23 }
  0xac   : > { %749 = vrot.lane.b32.xlu0 %v455_v33, %s1865_s23  ;;  %v627_v33 = vrot.slane %v2182_v58, 1 }
  0xad   : > { %v830_v27 = vpop.permute.xlu1 %829 }
  0xae   : > { %v814_v29 = vpop.permute.xlu0 %813  ;;  %v2247_v7 = vsel %vm608_vm0, %v627_v33, %v628_v40  ;;  %v1110_v24 = vsel %vm1092_vm8, %v1077_v20, %v830_v27 }
  0xaf   : > { %767 = vrot.lane.b32.xlu1 %v2215_v26, %s1865_s23  ;;  %v1094_v27 = vsel %vm1092_vm8, %v1061_v11, %v814_v29  ;;  %v980_v29 = vsel %vm960_vm4, %v947_v32, %v2150_v38 }
  0xb0   : > { %751 = vrot.lane.b32.xlu0 %v2219_v28, %s1865_s23  ;;  %v1013_v50 = vsel %vm993_vm6, %v980_v29, %v2170_v54  ;;  %v732_v29 = vshll.u32 %v1833_v53, 16 }
  0xb1   : > { %v2226_v31 = vpop.permute.xlu1 %831  ;;  %v1046_v38 = vsel %vm1026_vm5, %v1013_v50, %v2191_v62 }
  0xb2   : > { %v2231_v61 = vpop.permute.xlu0 %815  ;;  %v1079_v54 = vsel %vm1059_vm7, %v1046_v38, %v2209_v21 }
  0xb3   : > { %800 = vrot.lane.b32.xlu1 %v650_v45, %s1866_s24  ;;  %v2250_v45 = vld [vmem:[%s1914_s19 + $0x54] sm:$0xff]   ;;  %v1112_v42 = vsel %vm1092_vm8, %v1079_v54, %v2226_v31 }
  0xb4   : > { %784 = vrot.lane.b32.xlu0 %v2161_v49, %s1866_s24  ;;  %v2257_v49 = vld [vmem:[%s1914_s19 + $0xbc] ss:$0 sps:$4 sm:$0x11]   ;;  %v471_v17 = vshll.u32 %v2250_v45, 16  ;;  %v469_v59 = vshrl.u32 %v2250_v45, 16  ;;  %v630_v11 = vrot.slane %v2250_v45, 1 }
  0xb5   : > { %v877_v63 = vpop.permute.xlu1 %876  ;;  %v572_v37 = vshll.u32 %v2257_v49, 16 }
  0xb6   : > { %v861_v8 = vpop.permute.xlu0 %860  ;;  %v1143_v33 = vsel %vm1125_vm9, %v1110_v24, %v877_v63  ;;  %v473_v6 = vrot.slane %v471_v17, 1  ;;  %v997_v17 = vsel %vm993_vm6, %v964_v47, %v2172_v55 }
  0xb7   : > { %802 = vrot.lane.b32.xlu1 %v2235_v60, %s1866_s24  ;;  %v1127_v52 = vsel %vm1125_vm9, %v1094_v27, %v861_v8  ;;  %v574_v34 = vrot.slane %v572_v37, 1  ;;  %v1030_v20 = vsel %vm1026_vm5, %v997_v17, %v2195_v5  ;;  %v655_v37 = vrot.slane %v2257_v49, 1 }
  0xb8   : > { %786 = vrot.lane.b32.xlu0 %v2247_v7, %s1866_s24  ;;  %v474_v8 = vor.u32 %v473_v6, %v469_v59  ;;  %v1063_v22 = vsel %vm1059_vm7, %v1030_v20, %v2211_v25 }
  0xb9   : > { %v879_v15 = vpop.permute.xlu1 %878  ;;  %v575_v62 = vsel %vm383_vm1, %v570_v4, %v574_v34  ;;  %v1096_v57 = vsel %vm1092_vm8, %v1063_v22, %v2231_v61  ;;  %v734_v34 = vrot.slane %v732_v29, 1  ;;  %v773_v22 = vrot.slane %v1833_v53, 1 }
  0xba   : > { %v863_v30 = vpop.permute.xlu0 %862  ;;  %v1145_v55 = vsel %vm1125_vm9, %v1112_v42, %v879_v15  ;;  %v479_v5 = vsel %vm383_vm1, %v474_v8, %v478_v16 }
  0xbb   : > { %837 = vrot.lane.b32.xlu1 %v2176_v56, %s1867_s25  ;;  %v1129_v31 = vsel %vm1125_vm9, %v1096_v57, %v863_v30  ;;  %v654_v30 = vrot.slane %v2238_v3, 1 }
  0xbc   : > { %821 = vrot.lane.b32.xlu0 %v2182_v58, %s1867_s25 }
  0xbd   : > { %v912_v40 = vpop.permute.xlu1 %911  ;;  %v656_v59 = vsel %vm608_vm0, %v654_v30, %v655_v37  ;;  %v2417_v30 = vld [vmem:[%s1914_s19 + $0xd4] ss:$0 sps:$4 sm:$0x11]  }
  0xbe   : > { %v1176_v41 = vsel %vm1158_vm10, %v1143_v33, %v912_v40  ;;  %v896_v18 = vpop.permute.xlu0 %895  ;;  %v631_v33 = vrot.slane %v2267_v35, 1 }
  0xbf   : > { %839 = vrot.lane.b32.xlu1 %v2238_v3, %s1867_s25  ;;  %1741 = vmatprep.mubr.msk.bf16.mxu1 %vm1218_vm11, %v1176_v41  ;;  %v1160_v63 = vsel %vm1158_vm10, %v1127_v52, %v896_v18  ;;  %v1834_v18 = vld [vmem:[%s1914_s19 + $0xc8] ss:$0 sps:$4 sm:$0x11]  }
  0xc0   : > { %823 = vrot.lane.b32.xlu0 %v2250_v45, %s1867_s25  ;;  %1725 = vmatprep.mubr.msk.bf16.mxu0 %vm1218_vm11, %v1160_v63  ;;  %v632_v27 = vsel %vm608_vm0, %v630_v11, %v631_v33  ;;  %v737_v50 = vshll.u32 %v1834_v18, 16 }
  0xc1   : > { %v2307_v1 = vpop.permute.xlu1 %596 }
  0xc2   : > { %v2317_v19 = vpop.permute.xlu0 %580  ;;  %v739_v8 = vrot.slane %v737_v50, 1 }
  0xc3   : > { %884 = vrot.lane.b32.xlu1 %v2215_v26, %s1868_s30  ;;  %v933_v11 = vsel %vm927_vm3, %v1968_v46, %v2317_v19 }
  0xc4   : > { %868 = vrot.lane.b32.xlu0 %v2219_v28, %s1868_s30 }
  0xc5   : > { %v914_v21 = vpop.permute.xlu1 %913 }
  0xc6   : > { %v1178_v24 = vsel %vm1158_vm10, %v1145_v55, %v914_v21  ;;  %v898_v36 = vpop.permute.xlu0 %897  ;;  %v774_v55 = vrot.slane %v1834_v18, 1 }
  0xc7   : > { %886 = vrot.lane.b32.xlu1 %v575_v62, %s1868_s30  ;;  %1742 = vmatmul.mubr.msk.bf16.vlgmr.msra.gmra.mrb[0].mxu1 %vm1218_vm11, %v1178_v24  ;;  %v1162_v25 = vsel %vm1158_vm10, %v1129_v31, %v898_v36  ;;  %v2407_v24 = vld [vmem:[%s1914_s19 + $0xcc] sm:$0xff]   ;;  %v949_v31 = vsel %vm927_vm3, %v1962_v39, %v2307_v1 }
  0xc8   : > { %870 = vrot.lane.b32.xlu0 %v479_v5, %s1868_s30  ;;  %1726 = vmatmul.mubr.msk.bf16.vlgmr.msra.gmra.mrb[0].mxu0 %vm1218_vm11, %v1162_v25  ;;  %v851_v37 = vshll.u32 %v2407_v24, 16  ;;  %v849_v46 = vshrl.u32 %v2407_v24, 16 }
  0xc9   : > { %v2341_v15 = vpop.permute.xlu1 %598 }
  0xca   : > { %v2343_v61 = vpop.permute.xlu0 %582  ;;  %v853_v29 = vrot.slane %v851_v37, 1 }
  0xcb   : > { %919 = vrot.lane.b32.xlu1 %v2235_v60, %s1869_s6 }
  0xcc   : > { %903 = vrot.lane.b32.xlu0 %v2247_v7, %s1869_s6 }
  0xcd   : > { %v678_v32 = vpop.permute.xlu1 %677 }
  0xce   : > { %v2353_v40 = vpop.permute.xlu0 %661  ;;  %v982_v25 = vsel %vm960_vm4, %v949_v31, %v678_v32 }
  0xcf   : > { %604 = vrot.lane.b32.xlu1 %v2215_v26, %s1864_s22  ;;  %v966_v1 = vsel %vm960_vm4, %v933_v11, %v2353_v40 }
  0xd0   : > { %588 = vrot.lane.b32.xlu0 %v2219_v28, %s1864_s22 }
  0xd1   : > { %v2360_v49 = vpop.permute.xlu1 %679 }
  0xd2   : > { %v2363_v41 = vpop.permute.xlu0 %663 }
  0xd3   : > { %921 = vrot.lane.b32.xlu1 %v656_v59, %s1869_s6 }
  0xd4   : > { %905 = vrot.lane.b32.xlu0 %v632_v27, %s1869_s6 }
  0xd5   : > { %v715_v35 = vpop.permute.xlu1 %714 }
  0xd6   : > { %v699_v6 = vpop.permute.xlu0 %698  ;;  %v1015_v33 = vsel %vm993_vm6, %v982_v25, %v715_v35  ;;  %v893_v25 = vrot.slane %v2417_v30, 1 }
  0xd7   : > { %606 = vrot.lane.b32.xlu1 %v575_v62, %s1864_s22  ;;  %v999_v32 = vsel %vm993_vm6, %v966_v1, %v699_v6 }
  0xd8   : > { %590 = vrot.lane.b32.xlu0 %v479_v5, %s1864_s22 }
  0xd9   : > { %v2369_v26 = vpop.permute.xlu1 %716 }
  0xda   : > { %v2371_v28 = vpop.permute.xlu0 %700 }
  0xdb   : > { %685 = vrot.lane.b32.xlu1 %v2235_v60, %s1863_s21  ;;  %v730_v60 = vshrl.u32 %v1833_v53, 16 }
  0xdc   : > { %669 = vrot.lane.b32.xlu0 %v2247_v7, %s1863_s21 }
  0xdd   : > { %v762_v0 = vpop.permute.xlu1 %761  ;;  %v735_v38 = vor.u32 %v734_v34, %v730_v60  ;;  %v856_v60 = vshll.u32 %v2417_v30, 16 }
  0xde   : > { %v746_v52 = vpop.permute.xlu0 %745 }
  0xdf   : > { %687 = vrot.lane.b32.xlu1 %v656_v59, %s1863_s21  ;;  %v740_v54 = vsel %vm383_vm1, %v735_v38, %v739_v8  ;;  %v1032_v19 = vsel %vm1026_vm5, %v999_v32, %v746_v52  ;;  %v951_v52 = vsel %vm927_vm3, %v2010_v10, %v2341_v15  ;;  %v854_v38 = vor.u32 %v853_v29, %v849_v46  ;;  %v1837_v15 = vld [vmem:[%s1914_s19 + $0x6c] sm:$0xff]  }
  0xe0   : > { %671 = vrot.lane.b32.xlu0 %v632_v27, %s1863_s21  ;;  %v858_v8 = vrot.slane %v856_v60, 1 }
  0xe1   : > { %v2381_v63 = vpop.permute.xlu1 %763 }
  0xe2   : > { %v2383_v4 = vpop.permute.xlu0 %747  ;;  %v859_v31 = vsel %vm383_vm1, %v854_v38, %v858_v8 }
  0xe3   : > { %722 = vrot.lane.b32.xlu1 %v2238_v3, %s1862_s20 }
  0xe4   : > { %706 = vrot.lane.b32.xlu0 %v2250_v45, %s1862_s20 }
  0xe5   : > { %v797_v7 = vpop.permute.xlu1 %796 }
  0xe6   : > { %v781_v47 = vpop.permute.xlu0 %780 }
  0xe7   : > { %724 = vrot.lane.b32.xlu1 %v1833_v53, %s1862_s20  ;;  %v1065_v40 = vsel %vm1059_vm7, %v1032_v19, %v781_v47 }
  0xe8   : > { %708 = vrot.lane.b32.xlu0 %v1927_v2, %s1862_s20 }
  0xe9   : > { %v2392_v16 = vpop.permute.xlu1 %798 }
  0xea   : > { %v2394_v17 = vpop.permute.xlu0 %782 }
  0xeb   : > { %769 = vrot.lane.b32.xlu1 %v575_v62, %s1865_s23  ;;  %v2404_v62 = vsel %vm608_vm0, %v773_v22, %v774_v55 }
  0xec   : > { %753 = vrot.lane.b32.xlu0 %v479_v5, %s1865_s23 }
  0xed   : > { %v834_v20 = vpop.permute.xlu1 %833 }
  0xee   : > { %v818_v42 = vpop.permute.xlu0 %817 }
  0xef   : > { %771 = vrot.lane.b32.xlu1 %v740_v54, %s1865_s23 }
  0xf0   : > { %755 = vrot.lane.b32.xlu0 %v1978_v51, %s1865_s23 }
  0xf1   : > { %v836_v21 = vpop.permute.xlu1 %835 }
  0xf2   : > { %v820_v57 = vpop.permute.xlu0 %819 }
  0xf3   : > { %804 = vrot.lane.b32.xlu1 %v656_v59, %s1866_s24  ;;  %v1048_v59 = vsel %vm1026_vm5, %v1015_v33, %v762_v0 }
  0xf4   : > { %788 = vrot.lane.b32.xlu0 %v632_v27, %s1866_s24  ;;  %v1081_v27 = vsel %vm1059_vm7, %v1048_v59, %v797_v7 }
  0xf5   : > { %v881_v5 = vpop.permute.xlu1 %880  ;;  %v1114_v35 = vsel %vm1092_vm8, %v1081_v27, %v834_v20  ;;  %v935_v20 = vsel %vm927_vm3, %v2020_v14, %v2343_v61 }
  0xf6   : > { %v865_v36 = vpop.permute.xlu0 %864  ;;  %v1147_v0 = vsel %vm1125_vm9, %v1114_v35, %v881_v5 }
  0xf7   : > { %806 = vrot.lane.b32.xlu1 %v2404_v62, %s1866_s24 }
  0xf8   : > { %790 = vrot.lane.b32.xlu0 %v1940_v12, %s1866_s24 }
  0xf9   : > { %v883_v39 = vpop.permute.xlu1 %882 }
  0xfa   : > { %v867_v18 = vpop.permute.xlu0 %866 }
  0xfb   : > { %841 = vrot.lane.b32.xlu1 %v1833_v53, %s1867_s25  ;;  %v1098_v53 = vsel %vm1092_vm8, %v1065_v40, %v818_v42 }
  0xfc   : > { %825 = vrot.lane.b32.xlu0 %v1927_v2, %s1867_s25  ;;  %v1131_v50 = vsel %vm1125_vm9, %v1098_v53, %v865_v36  ;;  %v984_v2 = vsel %vm960_vm4, %v951_v52, %v2360_v49  ;;  %v968_v49 = vsel %vm960_vm4, %v935_v20, %v2363_v41 }
  0xfd   : > { %v916_v6 = vpop.permute.xlu1 %915  ;;  %v1017_v10 = vsel %vm993_vm6, %v984_v2, %v2369_v26  ;;  %v1001_v55 = vsel %vm993_vm6, %v968_v49, %v2371_v28 }
  0xfe   : > { %v1180_v34 = vsel %vm1158_vm10, %v1147_v0, %v916_v6  ;;  %v900_v7 = vpop.permute.xlu0 %899  ;;  %v1050_v22 = vsel %vm1026_vm5, %v1017_v10, %v2381_v63  ;;  %v1034_v26 = vsel %vm1026_vm5, %v1001_v55, %v2383_v4 }
  0xff   : > { %843 = vrot.lane.b32.xlu1 %v2407_v24, %s1867_s25  ;;  %1745 = vmatprep.mubr.msk.bf16.mxu1 %vm1218_vm11, %v1180_v34  ;;  %v1164_v47 = vsel %vm1158_vm10, %v1131_v50, %v900_v7  ;;  %v1083_v14 = vsel %vm1059_vm7, %v1050_v22, %v2392_v16  ;;  %v1067_v41 = vsel %vm1059_vm7, %v1034_v26, %v2394_v17  ;;  %v892_v17 = vrot.slane %v2407_v24, 1 }
 0x100   : > { %827 = vrot.lane.b32.xlu0 %v1837_v15, %s1867_s25  ;;  %1729 = vmatprep.mubr.msk.bf16.mxu0 %vm1218_vm11, %v1164_v47  ;;  %v1116_v5 = vsel %vm1092_vm8, %v1083_v14, %v836_v21  ;;  %v1100_v16 = vsel %vm1092_vm8, %v1067_v41, %v820_v57 }
 0x101   : > { %v601_v42 = vpop.permute.xlu1 %600  ;;  %v1149_v63 = vsel %vm1125_vm9, %v1116_v5, %v883_v39  ;;  %v1133_v36 = vsel %vm1125_vm9, %v1100_v16, %v867_v18  ;;  %v894_v37 = vsel %vm608_vm0, %v892_v17, %v893_v25 }
 0x102   : > { %v585_v61 = vpop.permute.xlu0 %584 }
 0x103   : > { %888 = vrot.lane.b32.xlu1 %v740_v54, %s1868_s30  ;;  %v937_v52 = vsel %vm927_vm3, %v2081_v44, %v585_v61 }
 0x104   : > { %872 = vrot.lane.b32.xlu0 %v1978_v51, %s1868_s30 }
 0x105   : > { %v918_v28 = vpop.permute.xlu1 %917 }
 0x106   : > { %v1182_v54 = vsel %vm1158_vm10, %v1149_v63, %v918_v28  ;;  %v902_v4 = vpop.permute.xlu0 %901 }
 0x107   : > { %890 = vrot.lane.b32.xlu1 %v859_v31, %s1868_s30  ;;  %1746 = vmatmul.mubr.msk.bf16.gmra.mrb[4].mxu1 %vm1218_vm11, %v1182_v54  ;;  %v1166_v21 = vsel %vm1158_vm10, %v1133_v36, %v902_v4 }
 0x108   : > { %874 = vrot.lane.b32.xlu0 %v1973_v48, %s1868_s30  ;;  %1730 = vmatmul.mubr.msk.bf16.gmra.mrb[4].mxu0 %vm1218_vm11, %v1166_v21 }
 0x109   : > { %v603_v51 = vpop.permute.xlu1 %602 }
 0x10a   : > { %v587_v57 = vpop.permute.xlu0 %586  ;;  %v955_v55 = vsel %vm927_vm3, %v2110_v9, %v603_v51 }
 0x10b   : > { %923 = vrot.lane.b32.xlu1 %v2404_v62, %s1869_s6  ;;  %v939_v31 = vsel %vm927_vm3, %v2115_v13, %v587_v57 }
 0x10c   : > { %907 = vrot.lane.b32.xlu0 %v1940_v12, %s1869_s6 }
 0x10d   : > { %v682_v11 = vpop.permute.xlu1 %681 }
 0x10e   : > { %v666_v33 = vpop.permute.xlu0 %665 }
 0x10f   : > { %925 = vrot.lane.b32.xlu1 %v894_v37, %s1869_s6  ;;  %v970_v2 = vsel %vm960_vm4, %v937_v52, %v666_v33 }
 0x110   : > { %909 = vrot.lane.b32.xlu0 %v1952_v23, %s1869_s6  ;;  %v953_v23 = vsel %vm927_vm3, %v2076_v43, %v601_v42 }
 0x111   : > { %v684_v48 = vpop.permute.xlu1 %683  ;;  %v986_v34 = vsel %vm960_vm4, %v953_v23, %v682_v11 }
 0x112   : > { %v668_v24 = vpop.permute.xlu0 %667  ;;  %v988_v26 = vsel %vm960_vm4, %v955_v55, %v684_v48 }
 0x113   : > { %v972_v28 = vsel %vm960_vm4, %v939_v31, %v668_v24 }
 0x115   : > { %v719_v30 = vpop.permute.xlu1 %718 }
 0x116   : > { %v703_v39 = vpop.permute.xlu0 %702  ;;  %v1019_v50 = vsel %vm993_vm6, %v986_v34, %v719_v30 }
 0x117   : > { %v1003_v38 = vsel %vm993_vm6, %v970_v2, %v703_v39 }
 0x119   : > { %v721_v1 = vpop.permute.xlu1 %720 }
 0x11a   : > { %v705_v59 = vpop.permute.xlu0 %704  ;;  %v1021_v41 = vsel %vm993_vm6, %v988_v26, %v721_v1 }
 0x11b   : > { %v1005_v16 = vsel %vm993_vm6, %v972_v28, %v705_v59 }
 0x11d   : > { %v766_v32 = vpop.permute.xlu1 %765 }
 0x11e   : > { %v750_v62 = vpop.permute.xlu0 %749  ;;  %v1052_v47 = vsel %vm1026_vm5, %v1019_v50, %v766_v32 }
 0x11f   : > { %v1036_v43 = vsel %vm1026_vm5, %v1003_v38, %v750_v62 }
 0x121   : > { %v768_v27 = vpop.permute.xlu1 %767 }
 0x122   : > { %v752_v18 = vpop.permute.xlu0 %751  ;;  %v1054_v9 = vsel %vm1026_vm5, %v1021_v41, %v768_v27 }
 0x123   : > { %v1038_v4 = vsel %vm1026_vm5, %v1005_v16, %v752_v18 }
 0x125   : > { %v801_v46 = vpop.permute.xlu1 %800 }
 0x126   : > { %v785_v19 = vpop.permute.xlu0 %784  ;;  %v1085_v8 = vsel %vm1059_vm7, %v1052_v47, %v801_v46 }
 0x127   : > { %v1069_v15 = vsel %vm1059_vm7, %v1036_v43, %v785_v19 }
 0x129   : > { %v803_v12 = vpop.permute.xlu1 %802 }
 0x12a   : > { %v787_v35 = vpop.permute.xlu0 %786  ;;  %v1087_v54 = vsel %vm1059_vm7, %v1054_v9, %v803_v12 }
 0x12b   : > { %v1071_v13 = vsel %vm1059_vm7, %v1038_v4, %v787_v35 }
 0x12d   : > { %v838_v29 = vpop.permute.xlu1 %837 }
 0x12e   : > { %v822_v60 = vpop.permute.xlu0 %821  ;;  %v1118_v10 = vsel %vm1092_vm8, %v1085_v8, %v838_v29 }
 0x12f   : > { %v1102_v49 = vsel %vm1092_vm8, %v1069_v15, %v822_v60 }
 0x131   : > { %v840_v40 = vpop.permute.xlu1 %839 }
 0x132   : > { %v824_v0 = vpop.permute.xlu0 %823  ;;  %v1120_v21 = vsel %vm1092_vm8, %v1087_v54, %v840_v40 }
 0x133   : > { %v1104_v51 = vsel %vm1092_vm8, %v1071_v13, %v824_v0 }
 0x135   : > { %v885_v6 = vpop.permute.xlu1 %884 }
 0x136   : > { %v869_v53 = vpop.permute.xlu0 %868  ;;  %v1151_v44 = vsel %vm1125_vm9, %v1118_v10, %v885_v6 }
 0x137   : > { %v1135_v14 = vsel %vm1125_vm9, %v1102_v49, %v869_v53 }
 0x139   : > { %v887_v7 = vpop.permute.xlu1 %886 }
 0x13a   : > { %v871_v20 = vpop.permute.xlu0 %870  ;;  %v1153_v17 = vsel %vm1125_vm9, %v1120_v21, %v887_v7 }
 0x13b   : > { %v1137_v37 = vsel %vm1125_vm9, %v1104_v51, %v871_v20 }
 0x13d   : > { %v920_v42 = vpop.permute.xlu1 %919 }
 0x13e   : > { %v1184_v22 = vsel %vm1158_vm10, %v1151_v44, %v920_v42  ;;  %v904_v61 = vpop.permute.xlu0 %903 }
 0x13f   : > { %1749 = vmatprep.mubr.msk.bf16.mxu1 %vm1218_vm11, %v1184_v22  ;;  %v1168_v5 = vsel %vm1158_vm10, %v1135_v14, %v904_v61 }
 0x140   : > { %1733 = vmatprep.mubr.msk.bf16.mxu0 %vm1218_vm11, %v1168_v5 }
 0x141   : > { %v605_v63 = vpop.permute.xlu1 %604 }
 0x142   : > { %v589_v36 = vpop.permute.xlu0 %588  ;;  %v957_v50 = vsel %vm927_vm3, %v2176_v56, %v605_v63 }
 0x143   : > { %v941_v47 = vsel %vm927_vm3, %v2182_v58, %v589_v36 }
 0x145   : > { %v922_v25 = vpop.permute.xlu1 %921 }
 0x146   : > { %v1186_v57 = vsel %vm1158_vm10, %v1153_v17, %v922_v25  ;;  %v906_v11 = vpop.permute.xlu0 %905 }
 0x147   : > { %1750 = vmatmul.mubr.msk.bf16.gmra.mrb[8].mxu1 %vm1218_vm11, %v1186_v57  ;;  %v1170_v33 = vsel %vm1158_vm10, %v1137_v37, %v906_v11  ;;  %v2580_v11 = vld [vmem:[%s2695_s2] ss:$0 sm:$0xff] }
 0x148   : > { %1734 = vmatmul.mubr.msk.bf16.gmra.mrb[8].mxu0 %vm1218_vm11, %v1170_v33 }
 0x149   : > { %v607_v48 = vpop.permute.xlu1 %606 }
 0x14a   : > { %v591_v24 = vpop.permute.xlu0 %590  ;;  %v959_v10 = vsel %vm927_vm3, %v2238_v3, %v607_v48 }
 0x14b   : > { %v943_v22 = vsel %vm927_vm3, %v2250_v45, %v591_v24 }
 0x14d   : > { %v686_v30 = vpop.permute.xlu1 %685 }
 0x14e   : > { %v670_v39 = vpop.permute.xlu0 %669  ;;  %v990_v2 = vsel %vm960_vm4, %v957_v50, %v686_v30 }
 0x14f   : > { %v974_v20 = vsel %vm960_vm4, %v941_v47, %v670_v39 }
 0x151   : > { %v688_v1 = vpop.permute.xlu1 %687 }
 0x152   : > { %v672_v59 = vpop.permute.xlu0 %671  ;;  %v992_v42 = vsel %vm960_vm4, %v959_v10, %v688_v1 }
 0x153   : > { %v976_v26 = vsel %vm960_vm4, %v943_v22, %v672_v59 }
 0x155   : > { %v723_v32 = vpop.permute.xlu1 %722 }
 0x156   : > { %v707_v62 = vpop.permute.xlu0 %706  ;;  %v1023_v38 = vsel %vm993_vm6, %v990_v2, %v723_v32 }
 0x157   : > { %v1007_v15 = vsel %vm993_vm6, %v974_v20, %v707_v62 }
 0x159   : > { %v725_v27 = vpop.permute.xlu1 %724 }
 0x15a   : > { %v709_v18 = vpop.permute.xlu0 %708  ;;  %v1025_v55 = vsel %vm993_vm6, %v992_v42, %v725_v27 }
 0x15b   : > { %v1009_v63 = vsel %vm993_vm6, %v976_v26, %v709_v18 }
 0x15d   : > { %v770_v46 = vpop.permute.xlu1 %769 }
 0x15e   : > { %v754_v19 = vpop.permute.xlu0 %753  ;;  %v1056_v43 = vsel %vm1026_vm5, %v1023_v38, %v770_v46 }
 0x15f   : > { %v1040_v49 = vsel %vm1026_vm5, %v1007_v15, %v754_v19 }
 0x161   : > { %v772_v12 = vpop.permute.xlu1 %771 }
 0x162   : > { %v756_v35 = vpop.permute.xlu0 %755  ;;  %v1058_v5 = vsel %vm1026_vm5, %v1025_v55, %v772_v12 }
 0x163   : > { %v1042_v16 = vsel %vm1026_vm5, %v1009_v63, %v756_v35 }
 0x165   : > { %v805_v29 = vpop.permute.xlu1 %804 }
 0x166   : > { %v789_v60 = vpop.permute.xlu0 %788  ;;  %v1089_v56 = vsel %vm1059_vm7, %v1056_v43, %v805_v29 }
 0x167   : > { %v1073_v14 = vsel %vm1059_vm7, %v1040_v49, %v789_v60 }
 0x169   : > { %v807_v40 = vpop.permute.xlu1 %806 }
 0x16a   : > { %v791_v0 = vpop.permute.xlu0 %790  ;;  %v1091_v28 = vsel %vm1059_vm7, %v1058_v5, %v807_v40 }
 0x16b   : > { %v1075_v4 = vsel %vm1059_vm7, %v1042_v16, %v791_v0 }
 0x16d   : > { %v842_v6 = vpop.permute.xlu1 %841 }
 0x16e   : > { %v826_v23 = vpop.permute.xlu0 %825  ;;  %v1122_v58 = vsel %vm1092_vm8, %v1089_v56, %v842_v6 }
 0x16f   : > { %v1106_v31 = vsel %vm1092_vm8, %v1073_v14, %v826_v23 }
 0x171   : > { %v844_v53 = vpop.permute.xlu1 %843 }
 0x172   : > { %v828_v34 = vpop.permute.xlu0 %827  ;;  %v1124_v54 = vsel %vm1092_vm8, %v1091_v28, %v844_v53 }
 0x173   : > { %v1108_v17 = vsel %vm1092_vm8, %v1075_v4, %v828_v34 }
 0x175   : > { %v889_v52 = vpop.permute.xlu1 %888 }
 0x176   : > { %v873_v7 = vpop.permute.xlu0 %872  ;;  %v1155_v3 = vsel %vm1125_vm9, %v1122_v58, %v889_v52 }
 0x177   : > { %v1139_v45 = vsel %vm1125_vm9, %v1106_v31, %v873_v7 }
 0x179   : > { %v891_v8 = vpop.permute.xlu1 %890 }
 0x17a   : > { %v875_v44 = vpop.permute.xlu0 %874  ;;  %v1157_v21 = vsel %vm1125_vm9, %v1124_v54, %v891_v8 }
 0x17b   : > { %v1141_v51 = vsel %vm1125_vm9, %v1108_v17, %v875_v44 }
 0x17d   : > { %v924_v61 = vpop.permute.xlu1 %923 }
 0x17e   : > { %v1188_v41 = vsel %vm1158_vm10, %v1155_v3, %v924_v61  ;;  %v908_v9 = vpop.permute.xlu0 %907 }
 0x17f   : > { %1753 = vmatprep.mubr.msk.bf16.mxu1 %vm1218_vm11, %v1188_v41  ;;  %v1172_v36 = vsel %vm1158_vm10, %v1139_v45, %v908_v9 }
 0x180   : > { %1737 = vmatprep.mubr.msk.bf16.mxu0 %vm1218_vm11, %v1172_v36 }
 0x181   : > { %v926_v13 = vpop.permute.xlu1 %925 }
 0x182   : > { %v1190_v25 = vsel %vm1158_vm10, %v1157_v21, %v926_v13  ;;  %v910_v57 = vpop.permute.xlu0 %909 }
 0x183   : > { %1754 = vmatmul.mubr.msk.bf16.gmra.mrb[12].mxu1 %vm1218_vm11, %v1190_v25  ;;  %v1174_v37 = vsel %vm1158_vm10, %v1141_v51, %v910_v57 }
 0x184   : > { %1738 = vmatmul.mubr.msk.bf16.gmra.mrb[12].mxu0 %vm1218_vm11, %v1174_v37 }
 0x19a   : > { %v1743_v33 = vpop.f32.mrb[0].mxu1 }
 0x19b   : > { %v1362_v48 = vadd.f32 %v1743_v33, %v2580_v11  ;;  %v1353_v24 = vpop.f32.mrb[1].mxu1  ;;  %v1727_v30 = vpop.f32.mrb[0].mxu0 }
 0x19c   : > { %v1354_v39 = vadd.f32 %v2580_v11, %v1353_v24  ;;  %v1744_v1 = vpop.f32.mrb[2].mxu1  ;;  %v1298_v59 = vadd.f32 %v1727_v30, %v2580_v11  ;;  %v1289_v62 = vpop.f32.mrb[1].mxu0 }
 0x19d   : > { %vm1434_vm12 = vcmp.gt.f32.partialorder %v1362_v48, 0.0  ;;  %v1466_v32 = vmul.f32 0.2, %v1362_v48  ;;  %v1365_v27 = vadd.f32 %v1744_v1, %v2580_v11  ;;  %v1356_v18 = vpop.f32.mrb[3].mxu1  ;;  %v1290_v46 = vadd.f32 %v2580_v11, %v1289_v62  ;;  %v1728_v12 = vpop.f32.mrb[2].mxu0 }
 0x19e   : > { %vm1432_vm13 = vcmp.gt.f32.partialorder %v1354_v39, 0.0  ;;  %v1464_v19 = vmul.f32 0.2, %v1354_v39  ;;  %v1357_v35 = vadd.f32 %v2580_v11, %v1356_v18  ;;  %vm1418_vm14 = vcmp.gt.f32.partialorder %v1298_v59, 0.0  ;;  %v1292_v0 = vpop.f32.mrb[3].mxu0 }
 0x19f   : > { %v1450_v29 = vmul.f32 0.2, %v1298_v59  ;;  %v1498_v60 = vsel %vm1434_vm12, %v1362_v48, %v1466_v32  ;;  %v1301_v40 = vadd.f32 %v1728_v12, %v2580_v11  ;;  %vm1416_vm15 = vcmp.gt.f32.partialorder %v1290_v46, 0.0 }
 0x1a0   : > { %1530 = vst.msk [vmem:[%s2588_s16 + $0x90] sm:$0xff] %vm960_vm4, %v1498_v60  ;;  %v1448_v6 = vmul.f32 0.2, %v1290_v46  ;;  %v1496_v23 = vsel %vm1432_vm13, %v1354_v39, %v1464_v19  ;;  %vm1435_vm0 = vcmp.gt.f32.partialorder %v1365_v27, 0.0  ;;  %v1467_v52 = vmul.f32 0.2, %v1365_v27 }
 0x1a1   : > { %v1482_v53 = vsel %vm1418_vm14, %v1298_v59, %v1450_v29  ;;  %1528 = vst.msk [vmem:[%s2588_s16 + $0x80] sm:$0xff] %vm960_vm4, %v1496_v23  ;;  %vm1419_vm1 = vcmp.gt.f32.partialorder %v1301_v40, 0.0  ;;  %v1451_v34 = vmul.f32 0.2, %v1301_v40  ;;  %v1293_v7 = vadd.f32 %v2580_v11, %v1292_v0 }
 0x1a2   : > { %1514 = vst.msk [vmem:[%s2588_s16 + $0x10] sm:$0xff] %vm960_vm4, %v1482_v53  ;;  %v1480_v50 = vsel %vm1416_vm15, %v1290_v46, %v1448_v6  ;;  %vm1433_vm2 = vcmp.gt.f32.partialorder %v1357_v35, 0.0  ;;  %v1465_v2 = vmul.f32 0.2, %v1357_v35  ;;  %v1499_v38 = vsel %vm1435_vm0, %v1365_v27, %v1467_v52 }
 0x1a3   : > { %1512 = vst.msk [vmem:[%s2588_s16] sm:$0xff] %vm960_vm4, %v1480_v50  ;;  %v1483_v47 = vsel %vm1419_vm1, %v1301_v40, %v1451_v34  ;;  %1531 = vst.msk [vmem:[%s2588_s16 + $0x98] sm:$0xff] %vm960_vm4, %v1499_v38  ;;  %vm1417_vm3 = vcmp.gt.f32.partialorder %v1293_v7, 0.0  ;;  %v1449_v8 = vmul.f32 0.2, %v1293_v7 }
 0x1a4   : > { %1515 = vst.msk [vmem:[%s2588_s16 + $0x18] sm:$0xff] %vm960_vm4, %v1483_v47  ;;  %v1497_v20 = vsel %vm1433_vm2, %v1357_v35, %v1465_v2 }
 0x1a5   : > { %1529 = vst.msk [vmem:[%s2588_s16 + $0x88] sm:$0xff] %vm960_vm4, %v1497_v20  ;;  %v1481_v43 = vsel %vm1417_vm3, %v1293_v7, %v1449_v8 }
 0x1a6   : > { %1513 = vst.msk [vmem:[%s2588_s16 + $0x8] sm:$0xff] %vm960_vm4, %v1481_v43 }
 0x1da   : > { %v1747_v10 = vpop.f32.mrb[4].mxu1 }
 0x1db   : > { %v1378_v15 = vadd.f32 %v1747_v10, %v2580_v11  ;;  %v1369_v56 = vpop.f32.mrb[5].mxu1  ;;  %v1731_v44 = vpop.f32.mrb[4].mxu0 }
 0x1dc   : > { %v1370_v42 = vadd.f32 %v2580_v11, %v1369_v56  ;;  %v1748_v49 = vpop.f32.mrb[6].mxu1  ;;  %v1314_v58 = vadd.f32 %v1731_v44, %v2580_v11  ;;  %v1305_v55 = vpop.f32.mrb[5].mxu0 }
 0x1dd   : > { %vm1438_vm5 = vcmp.gt.f32.partialorder %v1378_v15, 0.0  ;;  %v1470_v22 = vmul.f32 0.2, %v1378_v15  ;;  %v1381_v14 = vadd.f32 %v1748_v49, %v2580_v11  ;;  %v1372_v3 = vpop.f32.mrb[7].mxu1  ;;  %v1306_v61 = vadd.f32 %v2580_v11, %v1305_v55  ;;  %v1732_v5 = vpop.f32.mrb[6].mxu0 }
 0x1de   : > { %vm1436_vm6 = vcmp.gt.f32.partialorder %v1370_v42, 0.0  ;;  %v1468_v26 = vmul.f32 0.2, %v1370_v42  ;;  %v1373_v31 = vadd.f32 %v2580_v11, %v1372_v3  ;;  %vm1422_vm7 = vcmp.gt.f32.partialorder %v1314_v58, 0.0  ;;  %v1308_v45 = vpop.f32.mrb[7].mxu0 }
 0x1df   : > { %v1454_v41 = vmul.f32 0.2, %v1314_v58  ;;  %v1502_v63 = vsel %vm1438_vm5, %v1378_v15, %v1470_v22  ;;  %v1317_v28 = vadd.f32 %v1732_v5, %v2580_v11  ;;  %vm1420_vm8 = vcmp.gt.f32.partialorder %v1306_v61, 0.0 }
 0x1e0   : > { %1534 = vst.msk [vmem:[%s2588_s16 + $0xb0] sm:$0xff] %vm960_vm4, %v1502_v63  ;;  %v1452_v9 = vmul.f32 0.2, %v1306_v61  ;;  %v1500_v16 = vsel %vm1436_vm6, %v1370_v42, %v1468_v26  ;;  %vm1439_vm9 = vcmp.gt.f32.partialorder %v1381_v14, 0.0  ;;  %v1471_v4 = vmul.f32 0.2, %v1381_v14 }
 0x1e1   : > { %v1486_v54 = vsel %vm1422_vm7, %v1314_v58, %v1454_v41  ;;  %1532 = vst.msk [vmem:[%s2588_s16 + $0xa0] sm:$0xff] %vm960_vm4, %v1500_v16  ;;  %vm1423_vm10 = vcmp.gt.f32.partialorder %v1317_v28, 0.0  ;;  %v1455_v36 = vmul.f32 0.2, %v1317_v28  ;;  %v1309_v13 = vadd.f32 %v2580_v11, %v1308_v45 }
 0x1e2   : > { %1518 = vst.msk [vmem:[%s2588_s16 + $0x30] sm:$0xff] %vm960_vm4, %v1486_v54  ;;  %v1484_v21 = vsel %vm1420_vm8, %v1306_v61, %v1452_v9  ;;  %vm1437_vm11 = vcmp.gt.f32.partialorder %v1373_v31, 0.0  ;;  %v1469_v17 = vmul.f32 0.2, %v1373_v31  ;;  %v1503_v51 = vsel %vm1439_vm9, %v1381_v14, %v1471_v4 }
 0x1e3   : > { %1516 = vst.msk [vmem:[%s2588_s16 + $0x20] sm:$0xff] %vm960_vm4, %v1484_v21  ;;  %v1487_v25 = vsel %vm1423_vm10, %v1317_v28, %v1455_v36  ;;  %1535 = vst.msk [vmem:[%s2588_s16 + $0xb8] sm:$0xff] %vm960_vm4, %v1503_v51  ;;  %vm1421_vm12 = vcmp.gt.f32.partialorder %v1309_v13, 0.0  ;;  %v1453_v57 = vmul.f32 0.2, %v1309_v13 }
 0x1e4   : > { %1519 = vst.msk [vmem:[%s2588_s16 + $0x38] sm:$0xff] %vm960_vm4, %v1487_v25  ;;  %v1501_v37 = vsel %vm1437_vm11, %v1373_v31, %v1469_v17 }
 0x1e5   : > { %1533 = vst.msk [vmem:[%s2588_s16 + $0xa8] sm:$0xff] %vm960_vm4, %v1501_v37  ;;  %v1485_v33 = vsel %vm1421_vm12, %v1309_v13, %v1453_v57 }
 0x1e6   : > { %1517 = vst.msk [vmem:[%s2588_s16 + $0x28] sm:$0xff] %vm960_vm4, %v1485_v33 }
 0x21a   : > { %v1751_v48 = vpop.f32.mrb[8].mxu1 }
 0x21b   : > { %v1394_v24 = vadd.f32 %v1751_v48, %v2580_v11  ;;  %v1385_v30 = vpop.f32.mrb[9].mxu1  ;;  %v1735_v39 = vpop.f32.mrb[8].mxu0 }
 0x21c   : > { %v1386_v1 = vadd.f32 %v2580_v11, %v1385_v30  ;;  %v1752_v59 = vpop.f32.mrb[10].mxu1  ;;  %v1330_v32 = vadd.f32 %v1735_v39, %v2580_v11  ;;  %v1321_v27 = vpop.f32.mrb[9].mxu0 }
 0x21d   : > { %vm1442_vm13 = vcmp.gt.f32.partialorder %v1394_v24, 0.0  ;;  %v1474_v62 = vmul.f32 0.2, %v1394_v24  ;;  %v1397_v18 = vadd.f32 %v1752_v59, %v2580_v11  ;;  %v1388_v46 = vpop.f32.mrb[11].mxu1  ;;  %v1322_v19 = vadd.f32 %v2580_v11, %v1321_v27  ;;  %v1736_v35 = vpop.f32.mrb[10].mxu0 }
 0x21e   : > { %vm1440_vm14 = vcmp.gt.f32.partialorder %v1386_v1, 0.0  ;;  %v1472_v12 = vmul.f32 0.2, %v1386_v1  ;;  %v1389_v29 = vadd.f32 %v2580_v11, %v1388_v46  ;;  %vm1426_vm15 = vcmp.gt.f32.partialorder %v1330_v32, 0.0  ;;  %v1324_v6 = vpop.f32.mrb[11].mxu0 }
 0x21f   : > { %v1458_v60 = vmul.f32 0.2, %v1330_v32  ;;  %v1506_v40 = vsel %vm1442_vm13, %v1394_v24, %v1474_v62  ;;  %v1333_v0 = vadd.f32 %v1736_v35, %v2580_v11  ;;  %vm1424_vm0 = vcmp.gt.f32.partialorder %v1322_v19, 0.0 }
 0x220   : > { %1538 = vst.msk [vmem:[%s2588_s16 + $0xd0] sm:$0xff] %vm960_vm4, %v1506_v40  ;;  %v1456_v23 = vmul.f32 0.2, %v1322_v19  ;;  %v1504_v53 = vsel %vm1440_vm14, %v1386_v1, %v1472_v12  ;;  %vm1443_vm1 = vcmp.gt.f32.partialorder %v1397_v18, 0.0  ;;  %v1475_v50 = vmul.f32 0.2, %v1397_v18 }
 0x221   : > { %v1490_v34 = vsel %vm1426_vm15, %v1330_v32, %v1458_v60  ;;  %1536 = vst.msk [vmem:[%s2588_s16 + $0xc0] sm:$0xff] %vm960_vm4, %v1504_v53  ;;  %vm1427_vm2 = vcmp.gt.f32.partialorder %v1333_v0, 0.0  ;;  %v1459_v52 = vmul.f32 0.2, %v1333_v0  ;;  %v1325_v2 = vadd.f32 %v2580_v11, %v1324_v6 }
 0x222   : > { %1522 = vst.msk [vmem:[%s2588_s16 + $0x50] sm:$0xff] %vm960_vm4, %v1490_v34  ;;  %v1488_v7 = vsel %vm1424_vm0, %v1322_v19, %v1456_v23  ;;  %vm1441_vm3 = vcmp.gt.f32.partialorder %v1389_v29, 0.0  ;;  %v1473_v47 = vmul.f32 0.2, %v1389_v29  ;;  %v1507_v8 = vsel %vm1443_vm1, %v1397_v18, %v1475_v50 }
 0x223   : > { %1520 = vst.msk [vmem:[%s2588_s16 + $0x40] sm:$0xff] %vm960_vm4, %v1488_v7  ;;  %v1491_v38 = vsel %vm1427_vm2, %v1333_v0, %v1459_v52  ;;  %1539 = vst.msk [vmem:[%s2588_s16 + $0xd8] sm:$0xff] %vm960_vm4, %v1507_v8  ;;  %vm1425_vm5 = vcmp.gt.f32.partialorder %v1325_v2, 0.0  ;;  %v1457_v20 = vmul.f32 0.2, %v1325_v2 }
 0x224   : > { %1523 = vst.msk [vmem:[%s2588_s16 + $0x58] sm:$0xff] %vm960_vm4, %v1491_v38  ;;  %v1505_v43 = vsel %vm1441_vm3, %v1389_v29, %v1473_v47 }
 0x225   : > { %1537 = vst.msk [vmem:[%s2588_s16 + $0xc8] sm:$0xff] %vm960_vm4, %v1505_v43  ;;  %v1489_v10 = vsel %vm1425_vm5, %v1325_v2, %v1457_v20 }
 0x226   : > { %1521 = vst.msk [vmem:[%s2588_s16 + $0x48] sm:$0xff] %vm960_vm4, %v1489_v10 }
 0x256   : > { %v1755_v15 = vpop.f32.mrb[12].mxu1 }
 0x257   : > { %v1410_v56 = vadd.f32 %v1755_v15, %v2580_v11  ;;  %v1401_v44 = vpop.f32.mrb[13].mxu1  ;;  %v1739_v42 = vpop.f32.mrb[12].mxu0 }
 0x258   : > { %v1402_v49 = vadd.f32 %v2580_v11, %v1401_v44  ;;  %v1756_v58 = vpop.f32.mrb[14].mxu1  ;;  %v1346_v22 = vadd.f32 %v1739_v42, %v2580_v11  ;;  %v1337_v14 = vpop.f32.mrb[13].mxu0 }
 0x259   : > { %vm1446_vm6 = vcmp.gt.f32.partialorder %v1410_v56, 0.0  ;;  %v1478_v55 = vmul.f32 0.2, %v1410_v56  ;;  %v1413_v3 = vadd.f32 %v1756_v58, %v2580_v11  ;;  %v1404_v61 = vpop.f32.mrb[15].mxu1  ;;  %v1338_v26 = vadd.f32 %v2580_v11, %v1337_v14  ;;  %v1740_v31 = vpop.f32.mrb[14].mxu0 }
 0x25a   : > { %vm1444_vm7 = vcmp.gt.f32.partialorder %v1402_v49, 0.0  ;;  %v1476_v5 = vmul.f32 0.2, %v1402_v49  ;;  %v1405_v41 = vadd.f32 %v2580_v11, %v1404_v61  ;;  %vm1430_vm8 = vcmp.gt.f32.partialorder %v1346_v22, 0.0  ;;  %v1340_v9 = vpop.f32.mrb[15].mxu0 }
 0x25b   : > { %v1462_v63 = vmul.f32 0.2, %v1346_v22  ;;  %v1510_v28 = vsel %vm1446_vm6, %v1410_v56, %v1478_v55  ;;  %v1349_v45 = vadd.f32 %v1740_v31, %v2580_v11  ;;  %vm1428_vm9 = vcmp.gt.f32.partialorder %v1338_v26, 0.0 }
 0x25c   : > { %1542 = vst.msk [vmem:[%s2588_s16 + $0xf0] sm:$0xff] %vm960_vm4, %v1510_v28  ;;  %v1460_v16 = vmul.f32 0.2, %v1338_v26  ;;  %v1508_v54 = vsel %vm1444_vm7, %v1402_v49, %v1476_v5  ;;  %vm1447_vm10 = vcmp.gt.f32.partialorder %v1413_v3, 0.0  ;;  %v1479_v21 = vmul.f32 0.2, %v1413_v3 }
 0x25d   : > { %v1494_v36 = vsel %vm1430_vm8, %v1346_v22, %v1462_v63  ;;  %1540 = vst.msk [vmem:[%s2588_s16 + $0xe0] sm:$0xff] %vm960_vm4, %v1508_v54  ;;  %vm1431_vm11 = vcmp.gt.f32.partialorder %v1349_v45, 0.0  ;;  %v1463_v4 = vmul.f32 0.2, %v1349_v45  ;;  %v1341_v17 = vadd.f32 %v2580_v11, %v1340_v9 }
 0x25e   : > { %1526 = vst.msk [vmem:[%s2588_s16 + $0x70] sm:$0xff] %vm960_vm4, %v1494_v36  ;;  %v1492_v13 = vsel %vm1428_vm9, %v1338_v26, %v1460_v16  ;;  %vm1445_vm12 = vcmp.gt.f32.partialorder %v1405_v41, 0.0  ;;  %v1477_v25 = vmul.f32 0.2, %v1405_v41  ;;  %v1511_v57 = vsel %vm1447_vm10, %v1413_v3, %v1479_v21 }
 0x25f   : > { %1524 = vst.msk [vmem:[%s2588_s16 + $0x60] sm:$0xff] %vm960_vm4, %v1492_v13  ;;  %v1495_v51 = vsel %vm1431_vm11, %v1349_v45, %v1463_v4  ;;  %1543 = vst.msk [vmem:[%s2588_s16 + $0xf8] sm:$0xff] %vm960_vm4, %v1511_v57  ;;  %vm1429_vm13 = vcmp.gt.f32.partialorder %v1341_v17, 0.0  ;;  %v1461_v37 = vmul.f32 0.2, %v1341_v17 }
 0x260   : > { %1527 = vst.msk [vmem:[%s2588_s16 + $0x78] sm:$0xff] %vm960_vm4, %v1495_v51  ;;  %v1509_v33 = vsel %vm1445_vm12, %v1405_v41, %v1477_v25 }
 0x261   : > { %1541 = vst.msk [vmem:[%s2588_s16 + $0xe8] sm:$0xff] %vm960_vm4, %v1509_v33  ;;  %v1493_v48 = vsel %vm1429_vm13, %v1341_v17, %v1461_v37 }
 0x262   : > { %1525 = vst.msk [vmem:[%s2588_s16 + $0x68] sm:$0xff] %vm960_vm4, %v1493_v48 }
 0x263 PF: > { %s13_s14 = sadd.s32 1, %s1860_s14   ;;  %s2697_s12 = smov %s1856_s13 }
 0x264   : > { %p10_p5 = scmp.ge.s32.totalorder %s13_s14, 4   ;;  %s2698_s13 = smov %s2700_s15 }
 0x266   :  { %12 = sbr.rel (!%p10_p5) target bundleno = 2 (0x2), region = 63 }

</bundles_post_ra>
